<compile_context>
chip_gen: v5e
topology: v5e:2x2
jax: 0.10.0
libtpu: 0.0.40
codegen_flags: <defaults>
</compile_context>

<pallas_src>
import functools

import jax
import jax.numpy as jnp
from jax import lax
from jax.experimental import pallas as pl
from jax.experimental.pallas import tpu as pltpu


# ----------------------------------------------------------------------------
# pltpu.roll direction probe: resolved once with a concrete micro-kernel so the
# main kernel is robust to either rotation sign convention.  Assumes the
# default backend is a TPU (it runs a tiny eager pallas_call the first time).
# ----------------------------------------------------------------------------
def _roll_probe_kernel(x_ref, o_ref):
    o_ref[...] = pltpu.roll(x_ref[...], 1, 0)


@functools.cache
def _roll_is_np_style() -> bool:
    x = jnp.arange(8 * 128, dtype=jnp.float32).reshape(8, 128)
    out = pl.pallas_call(
        _roll_probe_kernel,
        out_shape=jax.ShapeDtypeStruct((8, 128), jnp.float32),
    )(x)
    # np.roll semantics: out[1, :] == x[0, :]
    return bool(out[1, 0] == x[0, 0])


# ----------------------------------------------------------------------------
# Kernel
# ----------------------------------------------------------------------------
def _residual_conv3x3_kernel(x_ref, xt_ref, xb_ref, w_ref, b_ref, o_ref,
                             acc_ref, *, roll_is_np_style):
    """3x3 same-padding conv + bias + residual for one (1, TH, W, C) row tile.

    x_ref  : (1, TH, W, Cin)  current row tile (also the residual branch)
    xt_ref : (1, 1,  W, Cin)  image row just above the tile (clamped at top)
    xb_ref : (1, 1,  W, Cin)  image row just below the tile (clamped at bottom)
    w_ref  : (9, Cin, Cout)   conv weights, tap-major (tap = (oy+1)*3 + (ox+1))
    b_ref  : (1, Cout)        bias (f32)
    o_ref  : (1, TH, W, Cout) output tile
    acc_ref: (TH*W, Cout)     f32 accumulator scratch
    """
    i = pl.program_id(1)
    n_th = pl.num_programs(1)
    _, TH, W, Cin = x_ref.shape
    Cout = w_ref.shape[2]
    P = TH * W            # flattened rows of the tile
    M = (TH - 1) * W      # flattened rows of the oy = +/-1 interior matmuls

    # Leading-dim merge (free: W % 8 == 0 keeps the (sublane, lane) layout).
    x = x_ref[0].reshape(P, Cin)

    # Column masks for the ox = +/-1 taps, hoisted out of the tap loops.  They
    # are periodic in W, so prefixes mask[:L] are valid for the shorter strips.
    col = lax.broadcasted_iota(jnp.int32, (P, 1), 0) % W
    not_left = col >= 1          # output columns that have a left neighbour
    not_right = col <= W - 2     # output columns that have a right neighbour

    def tap(oy, ox):
        return 3 * (oy + 1) + (ox + 1)

    def shifted(y, ox):
        """Apply the ox tap offset to a matmul result y of shape (L, Cout).

        out_flat[p] needs y[p + ox]; the rows the sublane roll wraps around
        land on column 0 (ox = -1) / column W-1 (ox = +1), which the mask
        zeroes, so the wraparound never leaks into the output.
        """
        if ox == 0:
            return y
        L = y.shape[0]
        amount = (-ox) % L if roll_is_np_style else ox % L
        y = pltpu.roll(y, amount, 0)
        mask = not_left if ox == -1 else not_right
        return jnp.where(mask[:L], y, 0.0)

    def mm(lhs, t):
        return jnp.dot(lhs, w_ref[t], preferred_element_type=jnp.float32)

    # Bias folded into the accumulator init.
    acc_ref[...] = jnp.broadcast_to(b_ref[...].astype(jnp.float32), (P, Cout))

    # oy = 0: every output row reads the tile itself.
    for ox in (-1, 0, 1):
        acc_ref[...] += shifted(mm(x, tap(0, ox)), ox)

    # oy = -1: output rows 1..TH-1 read tile rows 0..TH-2 (aligned slice);
    # output row 0 reads the halo row above the tile, skipped at the top image
    # border (== the conv's zero padding).
    if TH > 1:
        lhs = x[:M]
        for ox in (-1, 0, 1):
            acc_ref[W:P, :] += shifted(mm(lhs, tap(-1, ox)), ox)

    @pl.when(i > 0)
    def _():
        top = xt_ref[0, 0]
        for ox in (-1, 0, 1):
            acc_ref[0:W, :] += shifted(mm(top, tap(-1, ox)), ox)

    # oy = +1: output rows 0..TH-2 read tile rows 1..TH-1 (aligned slice);
    # output row TH-1 reads the halo row below the tile, skipped at the bottom
    # image border.
    if TH > 1:
        lhs = x[W:]
        for ox in (-1, 0, 1):
            acc_ref[0:M, :] += shifted(mm(lhs, tap(1, ox)), ox)

    @pl.when(i < n_th - 1)
    def _():
        bot = xb_ref[0, 0]
        for ox in (-1, 0, 1):
            acc_ref[M:P, :] += shifted(mm(bot, tap(1, ox)), ox)

    # Residual add + store.
    out = acc_ref[...] + x.astype(jnp.float32)
    o_ref[...] = out.reshape(1, TH, W, Cout).astype(o_ref.dtype)


# ----------------------------------------------------------------------------
# Wrappers
# ----------------------------------------------------------------------------
def _vmem_capacity_bytes() -> int:
    """Per-core VMEM capacity (128 MiB v5e/v6e, 64 MiB v7x); safe fallback."""
    try:
        cap = int(getattr(pltpu.get_tpu_info(), "vmem_capacity_bytes", 0))
        if cap > 0:
            return cap
    except Exception:
        pass
    return 64 << 20   # conservative: fits every supported generation


def _pick_row_tile(N, H, W, C, x_item, w_item, budget_bytes):
    """Largest divisor of H whose per-step working set fits the VMEM budget,
    preferring tiles that leave >= 4 grid steps so megacore has parallel work."""
    def working_set(th):
        per_row = W * C * (2 * x_item   # double-buffered input tile
                           + 2 * 4      # double-buffered f32 output tile
                           + 4          # f32 accumulator scratch
                           + 3 * 4)     # transient f32 matmul / mask temps
        fixed = (2 * 9 * C * C * w_item     # double-buffered resident weights
                 + 4 * W * C * x_item       # two double-buffered 1-row halos
                 + (1 << 20))               # compiler-internal headroom
        return th * per_row + fixed

    fits = [d for d in range(1, H + 1)
            if H % d == 0 and working_set(d) <= budget_bytes]
    if not fits:
        return 1
    min_steps = min(4, N * H)
    preferred = [d for d in fits if N * (H // d) >= min_steps]
    return max(preferred) if preferred else max(fits)


def residual_conv2d_nhwc(x_nhwc, w_hwio, bias, *, row_tile=None,
                         use_bf16_mxu=True):
    """ResidualLayer(Conv2d(C, C, 3, padding=1, bias=True)): conv(x) + bias + x.

    x_nhwc: (N, H, W, C)  (TPU-native channels-last layout)
    w_hwio: (3, 3, C, C)
    bias:   (C,)
    use_bf16_mxu: run the 9 MXU matmuls with bf16 inputs / f32 accumulation
      (3-4x MXU throughput on v5e/v6e/v7x).  Set False for exact f32 numerics.
    """
    N, H, W, C = x_nhwc.shape
    kh, kw, cin, cout = w_hwio.shape
    if (kh, kw) != (3, 3) or cin != C or cout != C:
        raise ValueError("expected (3, 3, C, C) weights for the residual conv")
    if W % 8 != 0:
        raise ValueError("W must be a multiple of 8 (sublane-aligned row merge)")

    mm_dtype = jnp.bfloat16 if use_bf16_mxu else x_nhwc.dtype
    # Casts happen once here (not per grid step inside the kernel); in bf16
    # mode this also halves the activation DMA bytes.
    x_mm = x_nhwc.astype(mm_dtype)
    w_taps = w_hwio.reshape(9, C, C).astype(mm_dtype)   # tap-major weights
    b2d = bias.reshape(1, C).astype(jnp.float32)

    vmem_cap = _vmem_capacity_bytes()
    vmem_budget = (vmem_cap * 3) // 4
    if row_tile is None:
        row_tile = _pick_row_tile(N, H, W, C,
                                  jnp.dtype(mm_dtype).itemsize,
                                  jnp.dtype(mm_dtype).itemsize,
                                  vmem_budget)
    if H % row_tile != 0:
        raise ValueError(f"row_tile={row_tile} must divide H={H}")
    th = row_tile
    n_th = H // th

    kernel = functools.partial(_residual_conv3x3_kernel,
                               roll_is_np_style=_roll_is_np_style())

    return pl.pallas_call(
        kernel,
        out_shape=jax.ShapeDtypeStruct((N, H, W, C), x_nhwc.dtype),
        grid_spec=pltpu.PrefetchScalarGridSpec(
            num_scalar_prefetch=0,
            grid=(N, n_th),
            in_specs=[
                # current row tile (conv LHS + residual branch)
                pl.BlockSpec((1, th, W, C), lambda n, i: (n, i, 0, 0)),
                # 1-row halos above / below the tile, clamped at the image
                # borders (their matmuls are skipped there via pl.when)
                pl.BlockSpec((1, 1, W, C),
                             lambda n, i: (n, jnp.maximum(i * th - 1, 0), 0, 0)),
                pl.BlockSpec((1, 1, W, C),
                             lambda n, i: (n, jnp.minimum(i * th + th, H - 1), 0, 0)),
                pl.BlockSpec((9, C, C), lambda n, i: (0, 0, 0)),
                pl.BlockSpec((1, C), lambda n, i: (0, 0)),
            ],
            out_specs=pl.BlockSpec((1, th, W, C), lambda n, i: (n, i, 0, 0)),
            scratch_shapes=[pltpu.VMEM((th * W, C), jnp.float32)],
        ),
        compiler_params=pltpu.CompilerParams(
            dimension_semantics=("parallel", "parallel"),
            vmem_limit_bytes=int(vmem_budget)),
    )(x_mm, x_mm, x_mm, w_taps, b2d)


def residual_conv2d_nchw(x_nchw, w_hwio, bias, **kwargs):
    """PyTorch-layout (NCHW) convenience wrapper.

    The transposes here are a one-time layout conversion; in a full network do
    the NCHW<->NHWC conversion once, not per residual block.
    """
    x_nhwc = jnp.transpose(x_nchw, (0, 2, 3, 1))
    out = residual_conv2d_nhwc(x_nhwc, w_hwio, bias, **kwargs)
    return jnp.transpose(out, (0, 3, 1, 2))


if __name__ == "__main__":
    key = jax.random.PRNGKey(0)
    k_x, k_w, k_b = jax.random.split(key, 3)

    N, C, H, W = 2, 4, 16, 16
    x_nhwc = jax.random.normal(k_x, (N, H, W, C), dtype=jnp.float32)
    w_hwio = jax.random.normal(k_w, (3, 3, C, C), dtype=jnp.float32) * 0.1
    bias = jax.random.normal(k_b, (C,), dtype=jnp.float32) * 0.1

    # XLA reference: conv(x) + bias + x  (same math as the PyTorch module).
    ref = lax.conv_general_dilated(
        x_nhwc, w_hwio, window_strides=(1, 1), padding="SAME",
        dimension_numbers=("NHWC", "HWIO", "NHWC"),
    ) + bias[None, None, None, :] + x_nhwc

    # Exact-numerics f32 path, forced row tiling to exercise the halo paths.
    out_f32 = jax.block_until_ready(
        residual_conv2d_nhwc(x_nhwc, w_hwio, bias, row_tile=8,
                             use_bf16_mxu=False))
    assert jnp.allclose(out_f32, ref, atol=1e-4, rtol=1e-4)

    # Default bf16-MXU path (f32 accumulation), auto row tile; looser check
    # since inputs are bf16-rounded once.
    out_bf16 = jax.block_until_ready(
        residual_conv2d_nhwc(x_nhwc, w_hwio, bias))
    assert jnp.allclose(out_bf16, ref, atol=1e-1, rtol=5e-2)

    # PyTorch-layout (NCHW) wrapper.
    x_nchw = jnp.transpose(x_nhwc, (0, 3, 1, 2))
    out_nchw = jax.block_until_ready(
        residual_conv2d_nchw(x_nchw, w_hwio, bias, use_bf16_mxu=False))
    assert jnp.allclose(out_nchw, jnp.transpose(ref, (0, 3, 1, 2)),
                        atol=1e-4, rtol=1e-4)

    print("KERNEL_OK")
</pallas_src>

<mosaic_0001>
module attributes {stable_mosaic.version = 11 : i64} {
  func.func @_roll_probe_kernel(%arg0: memref<8x128xf32, #tpu.memory_space<vmem>>, %arg1: memref<8x128xf32, #tpu.memory_space<vmem>>) attributes {dimension_semantics = [], scalar_prefetch = 0 : i64, scratch_operands = 0 : i64, tpu.core_type = #tpu.core_type<tc>} {
    %c0 = arith.constant 0 : index
    %c0_0 = arith.constant 0 : index
    %0 = vector.load %arg0[%c0, %c0_0] : memref<8x128xf32, #tpu.memory_space<vmem>>, vector<8x128xf32>
    %c1_i32 = arith.constant 1 : i32
    %1 = tpu.dynamic_rotate %0 by %c1_i32 dim 0 : vector<8x128xf32>, i32 -> vector<8x128xf32>
    %c0_1 = arith.constant 0 : index
    %c0_2 = arith.constant 0 : index
    %2 = vector.load %arg1[%c0_1, %c0_2] : memref<8x128xf32, #tpu.memory_space<vmem>>, vector<8x128xf32>
    tpu.vector_store %arg1[%c0_1, %c0_2], %1 {strides = array<i32>} : memref<8x128xf32, #tpu.memory_space<vmem>>, vector<8x128xf32>,
    return
  }
}

</mosaic_0001>

<bundles_post_ra>
// kernel: tpu_custom_call.1
= control target key start
LH: loop header
LB: loop body
LE: loop exit
PB: predicated region body
PF: predicated region fallthrough
CT: control target
= control target key end

     0   :  { %6 = vsyncpa [#allocation3], 0  ;;  %s115_s0 = inlined_call_operand.hbm [shape: f32[8,128], index: 0, kind: input, shape index: {}]   ;;  %s116_s1 = inlined_call_operand.hbm [shape: f32[8,128], index: 1, kind: output, shape index: {}]  }
   0x1   :  { %7 = vsyncpa [#allocation4], 0  ;;  %s13_s8 = sshll.u32 %s115_s0, 4  ;;  %s97_s9 = smov [#allocation2]   ;;  %s14_s8 = int_to_ptr.hbm [resolvable:$true] %s13_s8 }
   0x2   :  { %s15_s10 = sshll.u32 %s97_s9, 4  ;;  %s16_s10 = int_to_ptr.vmem [resolvable:$true] %s15_s10 }
   0x3   :  { %18 = dma.hbm_to_vmem [thread:$0]  %s14_s8, 128, %s16_s10, [#allocation3]  }
   0x4   :  { %93 = dma.done.wait [#allocation3], 128  }
   0x5   :  { %94 = vsyncadd [#allocation3], 4294967168  ;;  %s98_s11 = smov [#allocation5]   ;;  %s33_s15 = sshll.u32 %s116_s1, 4  ;;  %v23_v0 = vld [vmem:[#allocation2] sm:$0xff]  ;;  %s34_s15 = int_to_ptr.hbm [resolvable:$true] %s33_s15 }
   0x6   :  { %s31_s12 = sshll.u32 %s98_s11, 4  ;;  %v24_v1 = vrot.slane %v23_v0, 7  ;;  %s32_s12 = int_to_ptr.vmem [resolvable:$true] %s31_s12 }
   0x8   :  { %25 = vst [vmem:[#allocation5] sm:$0xff] %v24_v1 }
   0x9   :  { %36 = dma.vmem_to_hbm [thread:$0]  %s32_s12, 128, %s34_s15, [#allocation4]  }
   0xa   :  { %95 = dma.done.wait [#allocation4], 128  }
   0xb   :  { %96 = vsyncadd [#allocation4], 4294967168 }
   0xc   :  { %41 = vsyncpa [#allocation3], 1 }
   0xd   :  { %42 = vsyncpa [#allocation4], 1 }

</bundles_post_ra>
